<compile_context>
chip_gen: v7x
topology: tpu7x:2x2x1
jax: 0.10.0
libtpu: 0.0.40
codegen_flags: <defaults>
</compile_context>

<pallas_src>
import functools

import jax
import jax.numpy as jnp
from jax.experimental import pallas as pl
from jax.experimental.pallas import tpu as pltpu


# ---------------------------------------------------------------------------
# generation-aware VMEM budgets
# ---------------------------------------------------------------------------

@functools.lru_cache(maxsize=1)
def _vmem_budgets():
    """Returns (working_set_budget_bytes, vmem_limit_bytes)."""
    try:
        cap = pltpu.get_tpu_info().vmem_capacity_bytes
    except Exception:                                     # no query available
        cap = 64 * 1024 * 1024                            # assume v7x-sized VMEM
    if cap >= 100 * 1024 * 1024:                          # v5e / v6e: 128 MiB
        return 64 * 1024 * 1024, 100 * 1024 * 1024
    return 28 * 1024 * 1024, 52 * 1024 * 1024             # v7x: 64 MiB per TC


# ---------------------------------------------------------------------------
# tiling helpers
# ---------------------------------------------------------------------------

def _round_down(v: int, mult: int) -> int:
    return (v // mult) * mult


def _pick_divisor_tile(dim: int, candidates) -> int:
    """Largest candidate that evenly divides `dim`, else the full dim."""
    for c in candidates:
        if c <= dim and dim % c == 0:
            return c
    return dim


def _choose_fused_row_tile(m: int, tk: int, tn: int, itemsize: int,
                           budget: int) -> int:
    """MXU-aligned row tile for the fused kernel, sized against the
    double-buffered working set.  Never forces a row split just to create
    extra grid steps (the j / k axes already provide them)."""
    fixed2 = (tk * tn + tn) * itemsize        # w tile + bias tile (x2 buffered)
    per_row2 = (tk + 2 * tn) * itemsize       # x-stream + residual + out row
    acc_row = tn * 4                          # f32 accumulator (single buffer)

    def fits(tm):
        return 2 * (tm * per_row2 + fixed2) + tm * acc_row <= budget

    for tm in (2048, 1024, 512, 256, 128):    # MXU-aligned, largest first
        if tm <= m and fits(tm):
            return tm
    if m <= 256:
        return m                              # full-extent block (always legal)
    sub = 8 if itemsize >= 4 else 16
    tm = 128
    while tm > sub and not fits(tm):
        tm = max(sub, _round_down(tm // 2, sub))
    return tm


def _choose_add_row_tile(m: int, bytes_per_row: int, budget: int) -> int:
    """Row tile for the residual-add kernel (full columns per block)."""
    if m <= 8 or (m <= 1024 and 2 * m * bytes_per_row <= budget):
        return m
    tm = 2048
    while tm > 8 and (tm >= m or 2 * tm * bytes_per_row > budget):
        tm //= 2
    return tm


def _lane_dense_2d(a: jax.Array) -> jax.Array:
    """Flatten to 2-D with a lane-dense last dim (multiple of 128) when the
    element count allows; avoids masked partial stores for small hidden dims."""
    n = a.size
    for lane in (1024, 512, 256, 128):
        if n % lane == 0:
            return a.reshape(-1, lane)
    return a.reshape(-1, a.shape[-1])


# ---------------------------------------------------------------------------
# kernels
# ---------------------------------------------------------------------------

def _fused_residual_linear_kernel(x_ref, w_ref, r_ref, b_ref, o_ref, acc_ref):
    """acc += x_blk @ w_blk; on last k:  o = (acc + residual + bias).cast."""
    k = pl.program_id(2)

    @pl.when(k == 0)
    def _():
        acc_ref[...] = jnp.zeros_like(acc_ref)

    acc_ref[...] += jnp.dot(x_ref[...], w_ref[...],
                            preferred_element_type=jnp.float32)

    @pl.when(k == pl.num_programs(2) - 1)
    def _():
        o_ref[...] = (acc_ref[...]
                      + r_ref[...].astype(jnp.float32)
                      + b_ref[...].astype(jnp.float32)).astype(o_ref.dtype)


def _residual_add_kernel(x_ref, y_ref, o_ref):
    """Plain elementwise residual add on the VPU (in the promoted dtype)."""
    o_ref[...] = x_ref[...].astype(o_ref.dtype) + y_ref[...].astype(o_ref.dtype)


# ---------------------------------------------------------------------------
# pallas_call wrappers
# ---------------------------------------------------------------------------

@jax.jit
def _fused_residual_linear(x2d: jax.Array, w: jax.Array, b2d: jax.Array) -> jax.Array:
    m, d = x2d.shape
    itemsize = jnp.dtype(x2d.dtype).itemsize
    budget, vmem_limit = _vmem_budgets()

    tn = _pick_divisor_tile(d, (512, 256, 128))          # lane-dense out columns
    tk = _pick_divisor_tile(d, (1024, 512, 256, 128))    # reduction tile
    tm = _choose_fused_row_tile(m, tk, tn, itemsize, budget)

    grid = (pl.cdiv(m, tm), pl.cdiv(d, tn), pl.cdiv(d, tk))   # k innermost

    cost = pl.CostEstimate(
        flops=2 * m * d * d + 2 * m * d,
        transcendentals=0,
        bytes_accessed=itemsize * (2 * m * d + d * d + d + m * d),
    )

    return pl.pallas_call(
        _fused_residual_linear_kernel,
        out_shape=jax.ShapeDtypeStruct((m, d), x2d.dtype),
        grid_spec=pltpu.PrefetchScalarGridSpec(
            num_scalar_prefetch=0,
            grid=grid,
            in_specs=[
                pl.BlockSpec((tm, tk), lambda i, j, k: (i, k)),  # x (LHS stream)
                pl.BlockSpec((tk, tn), lambda i, j, k: (k, j)),  # w
                pl.BlockSpec((tm, tn), lambda i, j, k: (i, j)),  # x (residual)
                pl.BlockSpec((1, tn), lambda i, j, k: (0, j)),   # bias
            ],
            out_specs=pl.BlockSpec((tm, tn), lambda i, j, k: (i, j)),
            scratch_shapes=[pltpu.VMEM((tm, tn), jnp.float32)],
        ),
        compiler_params=pltpu.CompilerParams(
            dimension_semantics=("parallel", "parallel", "arbitrary"),
            vmem_limit_bytes=vmem_limit,
        ),
        cost_estimate=cost,
    )(x2d, w, x2d, b2d)


@jax.jit
def _residual_add(x2d: jax.Array, y2d: jax.Array) -> jax.Array:
    m, d = x2d.shape
    out_dtype = jnp.result_type(x2d.dtype, y2d.dtype)
    budget, vmem_limit = _vmem_budgets()
    bytes_per_row = d * (jnp.dtype(x2d.dtype).itemsize
                         + jnp.dtype(y2d.dtype).itemsize
                         + jnp.dtype(out_dtype).itemsize)
    tm = _choose_add_row_tile(m, bytes_per_row, budget)
    grid = (pl.cdiv(m, tm),)
    return pl.pallas_call(
        _residual_add_kernel,
        out_shape=jax.ShapeDtypeStruct((m, d), out_dtype),
        grid_spec=pltpu.PrefetchScalarGridSpec(
            num_scalar_prefetch=0,
            grid=grid,
            in_specs=[
                pl.BlockSpec((tm, d), lambda i: (i, 0)),
                pl.BlockSpec((tm, d), lambda i: (i, 0)),
            ],
            out_specs=pl.BlockSpec((tm, d), lambda i: (i, 0)),
        ),
        compiler_params=pltpu.CompilerParams(
            dimension_semantics=("parallel",),
            vmem_limit_bytes=vmem_limit,
        ),
    )(x2d, y2d)


# ---------------------------------------------------------------------------
# public API (mirrors ResidualBlock.forward(x, sublayer) = x + sublayer(x))
# ---------------------------------------------------------------------------

class LinearSublayer:
    """Square linear sublayer whose application can be fused into the residual
    kernel:  residual_block(x, LinearSublayer(w, b)) = x + x @ w + b."""

    def __init__(self, w: jax.Array, b: jax.Array):
        self.w = w
        self.b = b

    def __call__(self, t: jax.Array) -> jax.Array:       # plain-JAX reference
        return jnp.dot(t, self.w) + self.b


def residual_block(x: jax.Array, sublayer) -> jax.Array:
    """JAX/Pallas equivalent of ResidualBlock.forward(x, sublayer)."""
    d = x.shape[-1]
    if isinstance(sublayer, LinearSublayer) and tuple(sublayer.w.shape) == (d, d):
        # Fused path: matmul + bias + residual add in a single K-tiled kernel.
        x2d = x.reshape(-1, d)
        b2d = jnp.asarray(sublayer.b).reshape(1, d)
        out2d = _fused_residual_linear(x2d, sublayer.w, b2d)
        return out2d.reshape(x.shape)

    # Generic path: arbitrary user callable evaluated as plain-JAX glue; only
    # the residual add runs in a tiled, lane-dense Pallas kernel.
    # TODO(synk): arbitrary Python callables cannot be traced into the kernel
    # body; when possible, fusing this add into the sublayer's epilogue via XLA
    # avoids one extra HBM read of y.
    y = sublayer(x)
    assert y.shape == x.shape, "sublayer must preserve shape for the residual add"
    x2d = _lane_dense_2d(x)
    y2d = _lane_dense_2d(y)
    out2d = _residual_add(x2d, y2d)
    return out2d.reshape(x.shape)


if __name__ == "__main__":
    key = jax.random.PRNGKey(0)
    kx, kw, kb, kx2, kw2, kb2 = jax.random.split(key, 6)

    # Small shapes implied by the forward: (batch=2, seq=8, hidden=32).
    B, S, D = 2, 8, 32
    x = jax.random.normal(kx, (B, S, D), dtype=jnp.float32)
    w = jax.random.normal(kw, (D, D), dtype=jnp.float32) * (1.0 / jnp.sqrt(D))
    b = jax.random.normal(kb, (D,), dtype=jnp.float32) * 0.01

    # 1) Fused path: linear sublayer folded into the residual kernel.
    lin = LinearSublayer(w, b)
    out_fused = jax.block_until_ready(residual_block(x, lin))
    ref_fused = x + lin(x)
    assert jnp.allclose(out_fused, ref_fused, atol=1e-5, rtol=1e-5), "fused mismatch"

    # 1b) Moderate shape exercising multiple row tiles / partial last block.
    M2, D2 = 384, 256
    x2 = jax.random.normal(kx2, (M2, D2), dtype=jnp.float32)
    w2 = jax.random.normal(kw2, (D2, D2), dtype=jnp.float32) * (1.0 / jnp.sqrt(D2))
    b2 = jax.random.normal(kb2, (D2,), dtype=jnp.float32) * 0.01
    lin2 = LinearSublayer(w2, b2)
    out2 = jax.block_until_ready(residual_block(x2, lin2))
    ref2 = x2 + lin2(x2)
    assert jnp.allclose(out2, ref2, atol=1e-4, rtol=1e-4), "fused (tiled) mismatch"

    # 2) Generic path: arbitrary (non-linear) sublayer, tiled residual add.
    def gelu_sublayer(t):
        return jax.nn.gelu(t)

    out_gen = jax.block_until_ready(residual_block(x, gelu_sublayer))
    ref_gen = x + gelu_sublayer(x)
    assert jnp.allclose(out_gen, ref_gen, atol=1e-5, rtol=1e-5), "generic mismatch"

    print("KERNEL_OK")
</pallas_src>

<mosaic_0001>
module attributes {stable_mosaic.version = 11 : i64} {
  func.func @_fused_residual_linear_kernel(%arg0: i32, %arg1: i32, %arg2: i32, %arg3: memref<16x32xf32, #tpu.memory_space<vmem>>, %arg4: memref<32x32xf32, #tpu.memory_space<vmem>>, %arg5: memref<16x32xf32, #tpu.memory_space<vmem>>, %arg6: memref<1x32xf32, #tpu.memory_space<vmem>>, %arg7: memref<16x32xf32, #tpu.memory_space<vmem>>, %arg8: memref<16x32xf32, #tpu.memory_space<vmem>>) attributes {dimension_semantics = [#tpu.dimension_semantics<parallel>, #tpu.dimension_semantics<parallel>, #tpu.dimension_semantics<arbitrary>], iteration_bounds = array<i64: 1, 1, 1>, scalar_prefetch = 0 : i64, scratch_operands = 1 : i64, tpu.core_type = #tpu.core_type<tc>, window_params = [{transform_indices = @transform_0, window_bounds = array<i64: 16, 32>}, {transform_indices = @transform_1, window_bounds = array<i64: 32, 32>}, {transform_indices = @transform_2, window_bounds = array<i64: 16, 32>}, {transform_indices = @transform_3, window_bounds = array<i64: 1, 32>}, {transform_indices = @transform_4, window_bounds = array<i64: 16, 32>}]} {
    %c0_i32 = arith.constant 0 : i32
    %0 = arith.cmpi eq, %arg2, %c0_i32 : i32
    %1 = arith.extui %0 : i1 to i32
    %c0_i32_0 = arith.constant 0 : i32
    %2 = arith.cmpi ne, %1, %c0_i32_0 : i32
    scf.if %2 {
      %cst_10 = arith.constant 0.000000e+00 : f32
      %12 = vector.broadcast %cst_10 : f32 to vector<16x32xf32>
      %c0_11 = arith.constant 0 : index
      %c0_12 = arith.constant 0 : index
      %13 = vector.load %arg8[%c0_11, %c0_12] : memref<16x32xf32, #tpu.memory_space<vmem>>, vector<16x32xf32>
      tpu.vector_store %arg8[%c0_11, %c0_12], %12 {strides = array<i32>} : memref<16x32xf32, #tpu.memory_space<vmem>>, vector<16x32xf32>,
    } else {
    }
    %c0 = arith.constant 0 : index
    %c0_1 = arith.constant 0 : index
    %3 = vector.load %arg8[%c0, %c0_1] : memref<16x32xf32, #tpu.memory_space<vmem>>, vector<16x32xf32>
    %c0_2 = arith.constant 0 : index
    %c0_3 = arith.constant 0 : index
    %4 = vector.load %arg3[%c0_2, %c0_3] : memref<16x32xf32, #tpu.memory_space<vmem>>, vector<16x32xf32>
    %c0_4 = arith.constant 0 : index
    %c0_5 = arith.constant 0 : index
    %5 = vector.load %arg4[%c0_4, %c0_5] : memref<32x32xf32, #tpu.memory_space<vmem>>, vector<32x32xf32>
    %cst = arith.constant dense<0.000000e+00> : vector<16x32xf32>
    %6 = tpu.matmul %4, %5, %cst {dimension_numbers = #tpu.dot_dimension_numbers<[1], [0], [0], [1], [0, 0, 1, 1], [], []>} : vector<16x32xf32>, vector<32x32xf32>, vector<16x32xf32> -> vector<16x32xf32>
    %7 = arith.addf %3, %6 : vector<16x32xf32>
    %c0_6 = arith.constant 0 : index
    %c0_7 = arith.constant 0 : index
    %8 = vector.load %arg8[%c0_6, %c0_7] : memref<16x32xf32, #tpu.memory_space<vmem>>, vector<16x32xf32>
    tpu.vector_store %arg8[%c0_6, %c0_7], %7 {strides = array<i32>} : memref<16x32xf32, #tpu.memory_space<vmem>>, vector<16x32xf32>,
    %c0_i32_8 = arith.constant 0 : i32
    %9 = arith.cmpi eq, %arg2, %c0_i32_8 : i32
    %10 = arith.extui %9 : i1 to i32
    %c0_i32_9 = arith.constant 0 : i32
    %11 = arith.cmpi ne, %10, %c0_i32_9 : i32
    scf.if %11 {
      %c0_10 = arith.constant 0 : index
      %c0_11 = arith.constant 0 : index
      %12 = vector.load %arg8[%c0_10, %c0_11] : memref<16x32xf32, #tpu.memory_space<vmem>>, vector<16x32xf32>
      %c0_12 = arith.constant 0 : index
      %c0_13 = arith.constant 0 : index
      %13 = vector.load %arg5[%c0_12, %c0_13] : memref<16x32xf32, #tpu.memory_space<vmem>>, vector<16x32xf32>
      %14 = arith.addf %12, %13 : vector<16x32xf32>
      %c0_14 = arith.constant 0 : index
      %c0_15 = arith.constant 0 : index
      %15 = vector.load %arg6[%c0_14, %c0_15] : memref<1x32xf32, #tpu.memory_space<vmem>>, vector<1x32xf32>
      %16 = vector.broadcast %15 : vector<1x32xf32> to vector<16x32xf32>
      %17 = arith.addf %14, %16 : vector<16x32xf32>
      %c0_16 = arith.constant 0 : index
      %c0_17 = arith.constant 0 : index
      %18 = vector.load %arg7[%c0_16, %c0_17] : memref<16x32xf32, #tpu.memory_space<vmem>>, vector<16x32xf32>
      tpu.vector_store %arg7[%c0_16, %c0_17], %17 {strides = array<i32>} : memref<16x32xf32, #tpu.memory_space<vmem>>, vector<16x32xf32>,
    } else {
    }
    return
  }
  func.func @transform_0(%arg0: i32, %arg1: i32, %arg2: i32) -> (i32, i32) {
    %c0_i32 = arith.constant 0 : i32
    return %arg0, %arg2 : i32, i32
  }
  func.func @transform_1(%arg0: i32, %arg1: i32, %arg2: i32) -> (i32, i32) {
    %c0_i32 = arith.constant 0 : i32
    return %arg2, %arg1 : i32, i32
  }
  func.func @transform_2(%arg0: i32, %arg1: i32, %arg2: i32) -> (i32, i32) {
    %c0_i32 = arith.constant 0 : i32
    return %arg0, %arg1 : i32, i32
  }
  func.func @transform_3(%arg0: i32, %arg1: i32, %arg2: i32) -> (i32, i32) {
    %c0_i32 = arith.constant 0 : i32
    %c0_i32_0 = arith.constant 0 : i32
    return %c0_i32, %arg1 : i32, i32
  }
  func.func @transform_4(%arg0: i32, %arg1: i32, %arg2: i32) -> (i32, i32) {
    %c0_i32 = arith.constant 0 : i32
    return %arg0, %arg1 : i32, i32
  }
}

</mosaic_0001>

<bundles_post_ra>
// kernel: _fused_residual_linear.1
= control target key start
LH: loop header
LB: loop body
LE: loop exit
PB: predicated region body
PF: predicated region fallthrough
CT: control target
= control target key end

     0   :  { %9 = vsyncpa [#allocation4], 0  ;;  %s437_s0 = inlined_call_operand.hbm [shape: f32[16,32], index: 0, kind: input, shape index: {}, may-alias: {0,2}]   ;;  %s438_s1 = inlined_call_operand.hbm [shape: f32[32,32], index: 1, kind: input, shape index: {}]   ;;  %s439_s2 = inlined_call_operand.hbm [shape: f32[16,32], index: 2, kind: input, shape index: {}, may-alias: {0,2}]   ;;  %s440_s3 = inlined_call_operand.vmem [shape: f32[1,32], index: 3, kind: input, shape index: {}]   ;;  %s441_s4 = inlined_call_operand.hbm [shape: f32[16,32], index: 4, kind: output, shape index: {}]  }
   0x1   :  { %10 = vsyncpa [#allocation7], 0 }
   0x2   :  { %11 = vsyncpa [#allocation5], 0  ;;  %s327_s15 = smov [#allocation6]   ;;  %s328_s17 = smov [#allocation3]  }
   0x3   :  { %s29_s16 = sshll.u32 %s327_s15, 4  ;;  %s17_s18 = sshll.u32 %s328_s17, 4  ;;  %s30_s16 = int_to_ptr.vmem [resolvable:$true] %s29_s16  ;;  %s359_s18 = int_to_ptr.vmem [resolvable:$true] %s17_s18 }
   0x4   :  { %s233_s21 = scalar_lea.hbm %s438_s1, 512 }
   0x5   :  { %p234_p0 = scmp.ne.s32.totalorder %s438_s1, %s233_s21  ;;  %p237_p1 = scmp.lt.u32.totalorder %s233_s21, %s438_s1 }
   0x7   :  { %p239_p2 = pnand %p237_p1, %p234_p0 }
   0x9   :  { %242 = shalt.err (!%p239_p2)
}
   0xa   :  { %s243_s26 = scalar_lea.vmem %s30_s16, 512  ;;  %p248_p4 = scmp.lt.s32.totalorder %s30_s16, %s30_s16 }
   0xb   :  { %p244_p3 = scmp.ne.s32.totalorder %s30_s16, %s243_s26  ;;  %p249_p5 = scmp.lt.s32.totalorder %s243_s26, %s243_s26 }
   0xd   :  { %p250_p6 = por %p249_p5, %p248_p4 }
   0xf   :  { %p251_p7 = pnand %p250_p6, %p244_p3 }
  0x11   :  { %254 = shalt.err (!%p251_p7)
}
  0x12   :  { %s329_s27 = smov 128   ;;  %s330_s28 = smov 8  }
  0x13   :  { %35 = dma.hbm_to_vmem [thread:$0]  %s438_s1, 512, %s30_s16, [#allocation7], %s329_s27, %s329_s27, %s330_s28  }
  0x14   :  { %s255_s7 = scalar_lea.hbm %s437_s0, 256 }
  0x15   :  { %p256_p8 = scmp.ne.s32.totalorder %s437_s0, %s255_s7  ;;  %p259_p9 = scmp.lt.u32.totalorder %s255_s7, %s437_s0 }
  0x17   :  { %p261_p10 = pnand %p259_p9, %p256_p8 }
  0x19   :  { %264 = shalt.err (!%p261_p10)
}
  0x1a   :  { %s265_s12 = scalar_lea.vmem %s359_s18, 256  ;;  %p270_p12 = scmp.lt.s32.totalorder %s359_s18, %s359_s18 }
  0x1b   :  { %p266_p11 = scmp.ne.s32.totalorder %s359_s18, %s265_s12  ;;  %p271_p13 = scmp.lt.s32.totalorder %s265_s12, %s265_s12 }
  0x1d   :  { %p272_p0 = por %p271_p13, %p270_p12 }
  0x1f   :  { %p273_p1 = pnand %p272_p0, %p266_p11 }
  0x21   :  { %276 = shalt.err (!%p273_p1)
}
  0x22   :  { %23 = dma.hbm_to_vmem [thread:$0]  %s437_s0, 256, %s359_s18, [#allocation4], %s329_s27, %s329_s27, %s330_s28  }
  0x23   :  { %s331_s14 = smov [#allocation8]   ;;  %s277_s19 = scalar_lea.hbm %s439_s2, 256 }
  0x24   :  { %s41_s15 = sshll.u32 %s331_s14, 4  ;;  %p278_p2 = scmp.ne.s32.totalorder %s439_s2, %s277_s19  ;;  %s42_s15 = int_to_ptr.vmem [resolvable:$true] %s41_s15 }
  0x25   :  { %p281_p3 = scmp.lt.u32.totalorder %s277_s19, %s439_s2 }
  0x27   :  { %p283_p4 = pnand %p281_p3, %p278_p2 }
  0x29   :  { %286 = shalt.err (!%p283_p4)
}
  0x2a   :  { %s287_s24 = scalar_lea.vmem %s42_s15, 256  ;;  %p292_p6 = scmp.lt.s32.totalorder %s42_s15, %s42_s15 }
  0x2b   :  { %p288_p5 = scmp.ne.s32.totalorder %s42_s15, %s287_s24  ;;  %p293_p7 = scmp.lt.s32.totalorder %s287_s24, %s287_s24 }
  0x2d   :  { %p294_p8 = por %p293_p7, %p292_p6 }
  0x2f   :  { %p295_p9 = pnand %p294_p8, %p288_p5 }
  0x31   :  { %298 = shalt.err (!%p295_p9)
}
  0x32   :  { %47 = dma.hbm_to_vmem [thread:$0]  %s439_s2, 256, %s42_s15, [#allocation7], %s329_s27, %s329_s27, %s330_s28  }
  0x33   :  { %321 = dma.done.wait [#allocation4], 256  }
  0x34   :  { %322 = vsyncadd [#allocation4], 4294967040 }
  0x35   :  { %323 = dma.done.wait [#allocation7], 768  }
  0x36   :  { %324 = vsyncadd [#allocation7], 4294966528  ;;  %vm63_vm0 = vcmask 261120   ;;  %v332_v0 = vmov 0.0   ;;  %v70_v1 = vld [vmem:[#allocation6] sm:$0xff]  ;;  %v71_v2 = vld [vmem:[#allocation6 + $0x8] sm:$0xff] }
  0x37   :  { %65 = vst.msk [vmem:[#allocation2 + $0x8] sm:$0xff] %vm63_vm0, %v332_v0  ;;  %64 = vst.msk [vmem:[#allocation2] sm:$0xff] %vm63_vm0, %v332_v0  ;;  %v72_v3 = vld [vmem:[#allocation6 + $0x10] sm:$0xff]  ;;  %v218_v4 = vpack.c.bf16 %v71_v2, %v70_v1  ;;  %v73_v5 = vld [vmem:[#allocation6 + $0x18] sm:$0xff]  ;;  %s333_s26 = smov [#allocation9]  }
  0x38   :  { %v68_v6 = vld [vmem:[#allocation3] sm:$0xff]  ;;  %v222_v7 = vpack.c.bf16 %v73_v5, %v72_v3  ;;  %v69_v8 = vld [vmem:[#allocation3 + $0x8] sm:$0xff]  ;;  %v166_v15 = vld [vmem:[#allocation8 + $0x8] sm:$0xff]  ;;  %s185_s29 = sshll.u32 %s333_s26, 4  ;;  %s186_s29 = int_to_ptr.vmem [resolvable:$true] %s185_s29 }
  0x39   :  { %215 = vmatprep.mubr.msk.f32.mxu0 %vm63_vm0, %v68_v6  ;;  %219 = vmatprep.subr.bf16.mxu0 %v218_v4  ;;  %v165_v16 = vld [vmem:[#allocation8] sm:$0xff]  ;;  %s299_s30 = scalar_lea.vmem %s186_s29, 256  ;;  %p304_p11 = scmp.lt.s32.totalorder %s186_s29, %s186_s29 }
  0x3a   :  { %221 = vmatpush3.bf16.msra.mxu0 %v218_v4  ;;  %v200_v18 = vld [vmem:[%s440_s3] ss:$0 sm:$0xff]  ;;  %p300_p10 = scmp.ne.s32.totalorder %s186_s29, %s299_s30  ;;  %p305_p12 = scmp.lt.s32.totalorder %s299_s30, %s299_s30 }
  0x3b   :  { %223 = vmatprep.subr.bf16.mxu0 %v222_v7 }
  0x3c   :  { %p306_p13 = por %p305_p12, %p304_p11 }
  0x3e   :  { %225 = vmatpush3.bf16.msra.mxu0 %v222_v7  ;;  %v67_v9 = vld [vmem:[#allocation2 + $0x8] sm:$0xff]  ;;  %v66_v10 = vld [vmem:[#allocation2] sm:$0xff]  ;;  %p307_p0 = pnand %p306_p13, %p300_p10 }
  0x41   :  { %216 = vmatmul.mubr.msk.f32.vlgmr.msra.gmra.mrb[0].mxu0 %vm63_vm0, %v69_v8 }
 0x114   :  { %v217_v11 = vpop.f32.mrb[0].mxu0 }
 0x115   :  { %v157_v12 = vadd.f32 %v217_v11, %v67_v9  ;;  %v147_v13 = vpop.f32.mrb[1].mxu0 }
 0x116   :  { %v156_v14 = vadd.f32 %v147_v13, %v66_v10 }
 0x117   :  { %159 = vst.msk [vmem:[#allocation2 + $0x8] sm:$0xff] %vm63_vm0, %v157_v12 }
 0x118   :  { %158 = vst.msk [vmem:[#allocation2] sm:$0xff] %vm63_vm0, %v156_v14 }
 0x11e   :  { %v164_v17 = vld [vmem:[#allocation2 + $0x8] sm:$0xff] }
 0x11f   :  { %v163_v19 = vld [vmem:[#allocation2] sm:$0xff]  ;;  %v168_v20 = vadd.f32 %v166_v15, %v164_v17 }
 0x120   :  { %v167_v21 = vadd.f32 %v165_v16, %v163_v19 }
 0x121   :  { %v177_v22 = vadd.f32 %v200_v18, %v168_v20 }
 0x122   :  { %v176_v23 = vadd.f32 %v200_v18, %v167_v21 }
 0x123   :  { %179 = vst.msk [vmem:[#allocation9 + $0x8] sm:$0xff] %vm63_vm0, %v177_v22 }
 0x124   :  { %178 = vst.msk [vmem:[#allocation9] sm:$0xff] %vm63_vm0, %v176_v23 }
 0x125   :  { %310 = shalt.err (!%p307_p0)
}
 0x126   :  { %s311_s6 = scalar_lea.hbm %s441_s4, 256 }
 0x127   :  { %p312_p1 = scmp.ne.s32.totalorder %s441_s4, %s311_s6  ;;  %p315_p2 = scmp.lt.u32.totalorder %s311_s6, %s441_s4 }
 0x129   :  { %p317_p3 = pnand %p315_p2, %p312_p1 }
 0x12b   :  { %320 = shalt.err (!%p317_p3)
}
 0x12c   :  { %191 = dma.vmem_to_hbm [thread:$0]  %s186_s29, 256, %s441_s4, [#allocation5], %s329_s27, %s329_s27, %s330_s28  }
 0x12d   :  { %325 = dma.done.wait [#allocation5], 256  }
 0x12e   :  { %326 = vsyncadd [#allocation5], 4294967040 }
 0x12f   :  { %195 = vsyncpa [#allocation4], 1 }
 0x130   :  { %196 = vsyncpa [#allocation7], 1 }
 0x131   :  { %197 = vsyncpa [#allocation5], 1 }

</bundles_post_ra>
